<compile_context>
chip_gen: v5e
topology: v5e:2x2
jax: 0.10.0
libtpu: 0.0.40
codegen_flags: <defaults>
</compile_context>

<pallas_src>
import functools

import jax
import jax.numpy as jnp
from jax.experimental import pallas as pl
from jax.experimental.pallas import tpu as pltpu


def _round_up(n, m):
    return ((n + m - 1) // m) * m


def _choose_tile(batch, tm_req):
    """Pick batch tile (multiple of 8) and padded batch; prefer >= 2 grid blocks."""
    b8 = _round_up(batch, 8)
    tm = max(8, min(tm_req, b8))
    # Ensure >= 2 grid blocks when the batch permits, so the "parallel" batch
    # axis shards across both v7x TensorCores and the x DMA stays overlapped.
    if b8 // tm < 2 and b8 >= 16:
        tm = _round_up((b8 + 1) // 2, 8)
    b_p = _round_up(b8, tm)
    return tm, b_p


def mlp_kernel(x_ref, w1_ref, w2_ref, alpha_ref, o_ref):
    # Linear 1 (no bias): bf16 operands on the MXU, f32 accumulation.
    h = jnp.dot(x_ref[...], w1_ref[...], preferred_element_type=jnp.float32)
    # PReLU (single shared parameter, PyTorch default num_parameters=1), in f32.
    alpha = alpha_ref[0]
    h = jnp.where(h >= 0.0, h, alpha * h)
    # Linear 2 (no bias): cast activations to bf16 for the MXU, f32 accumulate.
    out = jnp.dot(h.astype(jnp.bfloat16), w2_ref[...],
                  preferred_element_type=jnp.float32)
    # F.normalize(out, dim=-1) == out / clamp_min(||out||, 1e-12)
    #                          == out * rsqrt(clamp_min(sum(out^2), 1e-24)).
    sumsq = jnp.sum(out * out, axis=-1, keepdims=True)
    inv = jax.lax.rsqrt(jnp.maximum(sumsq, 1e-24))
    o_ref[...] = (out * inv).astype(o_ref.dtype)


def prepare_params(w1, w2, alpha):
    """One-time weight prep (hoisted out of the per-call path).

    w1: [m1, fcUnit]       (PyTorch nn.Linear layout: [out, in])
    w2: [feature_dim, m1]
    Returns transposed, lane-padded bf16 weights + f32 alpha.
    """
    m1, f_in = w1.shape
    f_out, m1b = w2.shape
    assert m1 == m1b, "weight shapes inconsistent"
    f_in_p = _round_up(f_in, 128)
    m1_p = _round_up(m1, 128)
    f_out_p = _round_up(f_out, 128)
    w1p = jnp.zeros((f_in_p, m1_p), jnp.bfloat16).at[:f_in, :m1].set(
        w1.T.astype(jnp.bfloat16))
    w2p = jnp.zeros((m1_p, f_out_p), jnp.bfloat16).at[:m1, :f_out].set(
        w2.T.astype(jnp.bfloat16))
    alpha = jnp.asarray(alpha, jnp.float32).reshape((1,))
    return w1p, w2p, alpha


@functools.partial(jax.jit, static_argnames=("f_out", "tm_req"))
def my_mlp_forward(x, w1p, w2p, alpha, *, f_out, tm_req=256):
    """x: [B, F_in] f32; w1p/w2p: pre-padded bf16 from prepare_params."""
    B, F_in = x.shape
    F_in_p, M1_p = w1p.shape
    M1_p2, F_out_p = w2p.shape
    assert M1_p == M1_p2

    tm, B_p = _choose_tile(B, tm_req)
    grid = (B_p // tm,)

    # Fused cast -> pad over x (single streaming pass; no extra copy).
    xp = jnp.pad(x.astype(jnp.bfloat16),
                 ((0, B_p - B), (0, F_in_p - F_in)))

    cost = pl.CostEstimate(
        flops=2 * B_p * (F_in_p * M1_p + M1_p * F_out_p),
        transcendentals=B_p,
        bytes_accessed=(xp.size * 2 + w1p.size * 2 + w2p.size * 2
                        + B_p * F_out_p * 2 + 4),
    )

    out_p = pl.pallas_call(
        mlp_kernel,
        out_shape=jax.ShapeDtypeStruct((B_p, F_out_p), jnp.bfloat16),
        grid_spec=pltpu.PrefetchScalarGridSpec(
            num_scalar_prefetch=0,
            grid=grid,
            in_specs=[
                # x: batch-tiled, double-buffered behind the matmuls.
                pl.BlockSpec((tm, F_in_p), lambda i: (i, 0)),
                # Weights: constant block index -> resident in VMEM; single
                # buffer (double-buffering a constant block buys nothing).
                pl.BlockSpec((F_in_p, M1_p), lambda i: (0, 0),
                             pipeline_mode=pl.Buffered(1)),
                pl.BlockSpec((M1_p, F_out_p), lambda i: (0, 0),
                             pipeline_mode=pl.Buffered(1)),
                # PReLU alpha: whole (1,) scalar array in SMEM.
                pl.BlockSpec(memory_space=pltpu.MemorySpace.SMEM),
            ],
            out_specs=pl.BlockSpec((tm, F_out_p), lambda i: (i, 0)),
        ),
        compiler_params=pltpu.CompilerParams(
            dimension_semantics=("parallel",),
            vmem_limit_bytes=32 * 1024 * 1024,
        ),
        cost_estimate=cost,
    )(xp, w1p, w2p, alpha)

    return out_p[:B, :f_out]


def reference_forward_f32(x, w1, w2, alpha):
    """Exact f32 reference with PyTorch layouts & F.normalize semantics."""
    h = x @ w1.T
    h = jnp.where(h >= 0.0, h, alpha[0] * h)
    out = h @ w2.T
    norm = jnp.sqrt(jnp.sum(out * out, axis=-1, keepdims=True))
    return out / jnp.maximum(norm, 1e-12)


def reference_forward_bf16(x, w1, w2, alpha):
    """Mirror of the kernel's numerics (bf16 operands, f32 accumulation)."""
    h = jnp.dot(x.astype(jnp.bfloat16), w1.T.astype(jnp.bfloat16),
                preferred_element_type=jnp.float32)
    h = jnp.where(h >= 0.0, h, alpha[0] * h)
    out = jnp.dot(h.astype(jnp.bfloat16), w2.T.astype(jnp.bfloat16),
                  preferred_element_type=jnp.float32)
    inv = jax.lax.rsqrt(jnp.maximum(jnp.sum(out * out, -1, keepdims=True),
                                    1e-24))
    return out * inv


if __name__ == "__main__":
    # Small shapes consistent with the module graph: feature_dim_o=512 ->
    # m1=256, feature_dim=128 (module defaults 1984/128; scaled down, same graph).
    # B=20 exercises both the multi-block grid path and batch padding.
    B, F_IN, F_OUT = 20, 512, 128
    M1 = F_IN // 2

    key = jax.random.PRNGKey(0)
    kx, k1, k2 = jax.random.split(key, 3)

    x = jax.random.normal(kx, (B, F_IN), dtype=jnp.float32)
    # nn.Linear weights in PyTorch layout [out, in].
    w1 = (jax.random.uniform(k1, (M1, F_IN), dtype=jnp.float32) - 0.5) * (
        2.0 / jnp.sqrt(F_IN))
    w2 = (jax.random.uniform(k2, (F_OUT, M1), dtype=jnp.float32) - 0.5) * (
        2.0 / jnp.sqrt(M1))
    alpha = jnp.array([0.25], dtype=jnp.float32)  # PReLU default init

    # One-time weight prep (hoisted out of the per-call path).
    w1p, w2p, alpha_p = prepare_params(w1, w2, alpha)

    out = my_mlp_forward(x, w1p, w2p, alpha_p, f_out=F_OUT)
    jax.block_until_ready(out)

    assert out.shape == (B, F_OUT)
    out_f32 = out.astype(jnp.float32)

    # Check vs a reference using identical bf16/f32-accumulate math
    # (kernel output itself is bf16, so ~1e-2 absolute tolerance).
    ref_bf16 = reference_forward_bf16(x, w1, w2, alpha)
    assert jnp.allclose(out_f32, ref_bf16, atol=1.5e-2, rtol=1.5e-2), \
        "mismatch vs bf16-mirror reference"
    # Loose check vs the exact f32 PyTorch-semantics reference.
    ref_f32 = reference_forward_f32(x, w1, w2, alpha)
    assert jnp.allclose(out_f32, ref_f32, atol=3e-2, rtol=3e-2), \
        "mismatch vs f32 reference"
    # Rows should be (approximately, in bf16) unit-norm.
    assert jnp.allclose(jnp.linalg.norm(out_f32, axis=-1), 1.0, atol=2e-2)

    print("KERNEL_OK")
</pallas_src>

<mosaic_0001>
module attributes {stable_mosaic.version = 11 : i64} {
  func.func @mlp_kernel(%arg0: i32, %arg1: memref<16x512xbf16, #tpu.memory_space<vmem>>, %arg2: memref<512x256xbf16, #tpu.memory_space<vmem>>, %arg3: memref<256x128xbf16, #tpu.memory_space<vmem>>, %arg4: memref<1xf32, #tpu.memory_space<smem>>, %arg5: memref<16x128xbf16, #tpu.memory_space<vmem>>) attributes {dimension_semantics = [#tpu.dimension_semantics<parallel>], iteration_bounds = array<i64: 2>, scalar_prefetch = 0 : i64, scratch_operands = 0 : i64, tpu.core_type = #tpu.core_type<tc>, window_params = [{transform_indices = @transform_0, window_bounds = array<i64: 16, 512>}, {pipeline_mode = #tpu.pipeline_mode<synchronous>, transform_indices = @transform_1, window_bounds = array<i64: 512, 256>}, {pipeline_mode = #tpu.pipeline_mode<synchronous>, transform_indices = @transform_2, window_bounds = array<i64: 256, 128>}, {transform_indices = @transform_3, window_bounds = array<i64: 1>}, {transform_indices = @transform_4, window_bounds = array<i64: 16, 128>}]} {
    %c0 = arith.constant 0 : index
    %c0_0 = arith.constant 0 : index
    %0 = vector.load %arg1[%c0, %c0_0] : memref<16x512xbf16, #tpu.memory_space<vmem>>, vector<16x512xbf16>
    %c0_1 = arith.constant 0 : index
    %c0_2 = arith.constant 0 : index
    %1 = vector.load %arg2[%c0_1, %c0_2] : memref<512x256xbf16, #tpu.memory_space<vmem>>, vector<512x256xbf16>
    %cst = arith.constant dense<0.000000e+00> : vector<16x256xf32>
    %2 = tpu.matmul %0, %1, %cst {dimension_numbers = #tpu.dot_dimension_numbers<[1], [0], [0], [1], [0, 0, 1, 1], [], []>} : vector<16x512xbf16>, vector<512x256xbf16>, vector<16x256xf32> -> vector<16x256xf32>
    %c0_3 = arith.constant 0 : index
    %3 = memref.load %arg4[%c0_3] : memref<1xf32, #tpu.memory_space<smem>>
    %cst_4 = arith.constant 0.000000e+00 : f32
    %4 = vector.broadcast %cst_4 : f32 to vector<16x256xf32>
    %5 = arith.cmpf oge, %2, %4 : vector<16x256xf32>
    %6 = vector.broadcast %3 : f32 to vector<16x256xf32>
    %7 = arith.mulf %6, %2 : vector<16x256xf32>
    %8 = arith.select %5, %2, %7 : vector<16x256xi1>, vector<16x256xf32>
    %9 = arith.truncf %8 : vector<16x256xf32> to vector<16x256xbf16>
    %c0_5 = arith.constant 0 : index
    %c0_6 = arith.constant 0 : index
    %10 = vector.load %arg3[%c0_5, %c0_6] : memref<256x128xbf16, #tpu.memory_space<vmem>>, vector<256x128xbf16>
    %cst_7 = arith.constant dense<0.000000e+00> : vector<16x128xf32>
    %11 = tpu.matmul %9, %10, %cst_7 {dimension_numbers = #tpu.dot_dimension_numbers<[1], [0], [0], [1], [0, 0, 1, 1], [], []>} : vector<16x256xbf16>, vector<256x128xbf16>, vector<16x128xf32> -> vector<16x128xf32>
    %12 = arith.mulf %11, %11 : vector<16x128xf32>
    %cst_8 = arith.constant dense<0.000000e+00> : vector<16xf32>
    %13 = vector.multi_reduction <add>, %12, %cst_8 [1] : vector<16x128xf32> to vector<16xf32>
    %14 = vector.shape_cast %13 : vector<16xf32> to vector<16x1xf32>
    %cst_9 = arith.constant 1.000000e-24 : f32
    %15 = vector.broadcast %cst_9 : f32 to vector<16x1xf32>
    %16 = arith.maximumf %14, %15 : vector<16x1xf32>
    %17 = math.rsqrt %16 : vector<16x1xf32>
    %18 = vector.broadcast %17 : vector<16x1xf32> to vector<16x128xf32>
    %19 = arith.mulf %11, %18 : vector<16x128xf32>
    %20 = arith.truncf %19 : vector<16x128xf32> to vector<16x128xbf16>
    %c0_10 = arith.constant 0 : index
    %c0_11 = arith.constant 0 : index
    %21 = vector.load %arg5[%c0_10, %c0_11] : memref<16x128xbf16, #tpu.memory_space<vmem>>, vector<16x128xbf16>
    tpu.vector_store %arg5[%c0_10, %c0_11], %20 {strides = array<i32>} : memref<16x128xbf16, #tpu.memory_space<vmem>>, vector<16x128xbf16>,
    return
  }
  func.func @transform_0(%arg0: i32) -> (i32, i32) {
    %c0_i32 = arith.constant 0 : i32
    %c0_i32_0 = arith.constant 0 : i32
    return %arg0, %c0_i32 : i32, i32
  }
  func.func @transform_1(%arg0: i32) -> (i32, i32) {
    %c0_i32 = arith.constant 0 : i32
    %c0_i32_0 = arith.constant 0 : i32
    %c0_i32_1 = arith.constant 0 : i32
    return %c0_i32, %c0_i32_0 : i32, i32
  }
  func.func @transform_2(%arg0: i32) -> (i32, i32) {
    %c0_i32 = arith.constant 0 : i32
    %c0_i32_0 = arith.constant 0 : i32
    %c0_i32_1 = arith.constant 0 : i32
    return %c0_i32, %c0_i32_0 : i32, i32
  }
  func.func @transform_3(%arg0: i32) -> i32 {
    %c0_i32 = arith.constant 0 : i32
    %c0_i32_0 = arith.constant 0 : i32
    return %c0_i32 : i32
  }
  func.func @transform_4(%arg0: i32) -> (i32, i32) {
    %c0_i32 = arith.constant 0 : i32
    %c0_i32_0 = arith.constant 0 : i32
    return %arg0, %c0_i32 : i32, i32
  }
}

</mosaic_0001>

<bundles_post_ra>
// kernel: my_mlp_forward.1
= control target key start
LH: loop header
LB: loop body
LE: loop exit
PB: predicated region body
PF: predicated region fallthrough
CT: control target
= control target key end

     0   :  { %s1660_s0 = inlined_call_operand.vmem [shape: bf16[32,512], index: 0, kind: input, shape index: {}]   ;;  %s1661_s1 = inlined_call_operand.hbm [shape: bf16[512,256], index: 1, kind: input, shape index: {}]   ;;  %s1662_s2 = inlined_call_operand.vmem [shape: bf16[256,128], index: 2, kind: input, shape index: {}]   ;;  %s1663_s3 = inlined_call_operand.<no memory space> [shape: f32[1], index: 3, kind: input, shape index: {}]   ;;  %s1664_s4 = inlined_call_operand.vmem [shape: bf16[32,128], index: 4, kind: output, shape index: {}]  }
   0x1   :  { %9 = sst [smem:[#allocation2]] %s1663_s3 }
   0x2   :  { %10 = vsyncpa [#allocation4], 0  ;;  %s1554_s17 = smov 0  }
   0x3 LB: > { %s147_s20 = sshll.u32 %s1661_s1, 4  ;;  %s1016_s21 = sadd.s32 4294967295, %s1521_s17   ;;  %s1521_s17 = sphi %s1554_s17, %s16_s17   ;;  %s148_s20 = int_to_ptr.hbm [resolvable:$true] %s147_s20 }
   0x4   : > { %p1018_p0 = scmp.ge.s32.totalorder %s1521_s17, 1  ;;  %p136_p1 = scmp.lt.s32.totalorder %s1521_s17, 3 }
   0x5   : > { %p1464_p2 = scmp.eq.s32.totalorder %s1016_s21, 0  ;;  %s1523_s3 = smov [#allocation3]  }
   0x6   : > { %p137_p3 = pnand %p1018_p0, %p136_p1  ;;  %s149_s22 = sshll.u32 %s1523_s3, 4  ;;  %s150_s22 = int_to_ptr.vmem [resolvable:$true] %s149_s22 }
   0x7   : > { %s1524_s23 = smov 128   ;;  %s1525_s24 = smov 8  }
   0x8   : > { %p1460_p4 = pneg %p137_p3  ;;  %181 = sbr.rel (%p137_p3) target bundleno = 511 (0x1ff), region = 36 }
   0xa   : > { %p1461_p5 = pnand %p1464_p2, %p1460_p4 }
   0xc   : > { %1463 = dma.hbm_to_vmem [thread:$0]  (!%p1461_p5), %s148_s20, 8192, %s150_s22, [#allocation4], %s1524_s23, %s1524_s23, %s1525_s24  }
   0xd   : > { %1516 = dma.done.wait (%p1464_p2), [#allocation4], 8192  }
   0xe   : > { %1518 = vsyncadd (%p1464_p2), [#allocation4], 4294959104  ;;  %s1565_s25 = sshll.u32 %s1016_s21, 1  ;;  %v1102_v0 = vld [vmem:[#allocation3 + $0x70] sm:$0xf] }
   0xf   : > { %v1386_v1 = vld [vmem:[#allocation3 + $0x74] sm:$0xf0]  ;;  %v1166_v2 = vld [vmem:[#allocation3 + $0xf0] sm:$0xf]  ;;  %v1094_v11 = vld [vmem:[#allocation3 + $0x60] sm:$0xf] }
  0x10   : > { %v1103_v3 = vor.u32 %v1386_v1, %v1102_v0  ;;  %v1402_v4 = vld [vmem:[#allocation3 + $0xf4] sm:$0xf0]  ;;  %v1230_v5 = vld [vmem:[#allocation3 + $0x170] sm:$0xf]  ;;  %v1384_v13 = vld [vmem:[#allocation3 + $0x64] sm:$0xf0] }
  0x11   : > { %v1418_v6 = vld [vmem:[#allocation3 + $0x174] sm:$0xf0]  ;;  %v1167_v7 = vor.u32 %v1402_v4, %v1166_v2  ;;  %v1294_v9 = vld [vmem:[#allocation3 + $0x1f0] sm:$0xf]  ;;  %v1158_v14 = vld [vmem:[#allocation3 + $0xe0] sm:$0xf]  ;;  %v1095_v16 = vor.u32 %v1384_v13, %v1094_v11 }
  0x12   : > { %v1231_v8 = vor.u32 %v1418_v6, %v1230_v5  ;;  %v1434_v10 = vld [vmem:[#allocation3 + $0x1f4] sm:$0xf0]  ;;  %630 = vmatpush.bf16.msra.mxu0 %v1103_v3  ;;  %v1400_v15 = vld [vmem:[#allocation3 + $0xe4] sm:$0xf0]  ;;  %v1222_v18 = vld [vmem:[#allocation3 + $0x160] sm:$0xf] }
  0x13   : > { %v1295_v12 = vor.u32 %v1434_v10, %v1294_v9  ;;  %644 = vmatpush.bf16.msra.mxu1 %v1167_v7  ;;  %v1159_v17 = vor.u32 %v1400_v15, %v1158_v14  ;;  %v1416_v19 = vld [vmem:[#allocation3 + $0x164] sm:$0xf0]  ;;  %v1286_v20 = vld [vmem:[#allocation3 + $0x1e0] sm:$0xf]  ;;  %v1086_v23 = vld [vmem:[#allocation3 + $0x50] sm:$0xf] }
  0x14   : > { %658 = vmatpush.bf16.msra.mxu2 %v1231_v8  ;;  %v1223_v21 = vor.u32 %v1416_v19, %v1222_v18  ;;  %v1432_v22 = vld [vmem:[#allocation3 + $0x1e4] sm:$0xf0]  ;;  %v1382_v24 = vld [vmem:[#allocation3 + $0x54] sm:$0xf0]  ;;  %v1150_v26 = vld [vmem:[#allocation3 + $0xd0] sm:$0xf] }
  0x15   : > { %672 = vmatpush.bf16.msra.mxu3 %v1295_v12  ;;  %v1287_v25 = vor.u32 %v1432_v22, %v1286_v20  ;;  %v1398_v27 = vld [vmem:[#allocation3 + $0xd4] sm:$0xf0]  ;;  %v1214_v28 = vld [vmem:[#allocation3 + $0x150] sm:$0xf]  ;;  %v1087_v29 = vor.u32 %v1382_v24, %v1086_v23  ;;  %v1078_v35 = vld [vmem:[#allocation3 + $0x40] sm:$0xf] }
  0x16   : > { %631 = vmatpush.bf16.msra.mxu0 %v1095_v16  ;;  %v1414_v30 = vld [vmem:[#allocation3 + $0x154] sm:$0xf0]  ;;  %v1278_v31 = vld [vmem:[#allocation3 + $0x1d0] sm:$0xf]  ;;  %v1151_v33 = vor.u32 %v1398_v27, %v1150_v26  ;;  %v1380_v36 = vld [vmem:[#allocation3 + $0x44] sm:$0xf0] }
  0x17   : > { %v1430_v32 = vld [vmem:[#allocation3 + $0x1d4] sm:$0xf0]  ;;  %645 = vmatpush.bf16.msra.mxu1 %v1159_v17  ;;  %v1215_v34 = vor.u32 %v1414_v30, %v1214_v28  ;;  %v1142_v37 = vld [vmem:[#allocation3 + $0xc0] sm:$0xf]  ;;  %v1396_v39 = vld [vmem:[#allocation3 + $0xc4] sm:$0xf0]  ;;  %v1079_v44 = vor.u32 %v1380_v36, %v1078_v35 }
  0x18   : > { %659 = vmatpush.bf16.msra.mxu2 %v1223_v21  ;;  %v1279_v38 = vor.u32 %v1430_v32, %v1278_v31  ;;  %v1206_v40 = vld [vmem:[#allocation3 + $0x140] sm:$0xf]  ;;  %v1412_v41 = vld [vmem:[#allocation3 + $0x144] sm:$0xf0]  ;;  %p210_p6 = scmp.lt.s32.totalorder %s1565_s25, 3  ;;  %v1143_v45 = vor.u32 %v1396_v39, %v1142_v37 }
  0x19   : > { %673 = vmatpush.bf16.msra.mxu3 %v1287_v25  ;;  %v1270_v42 = vld [vmem:[#allocation3 + $0x1c0] sm:$0xf]  ;;  %v1428_v43 = vld [vmem:[#allocation3 + $0x1c4] sm:$0xf0]  ;;  %v1207_v46 = vor.u32 %v1412_v41, %v1206_v40  ;;  %v1070_v47 = vld [vmem:[#allocation3 + $0x30] sm:$0xf] }
  0x1a   : > { %632 = vmatpush.bf16.msra.mxu0 %v1087_v29  ;;  %v1378_v48 = vld [vmem:[#allocation3 + $0x34] sm:$0xf0]  ;;  %v1134_v49 = vld [vmem:[#allocation3 + $0xb0] sm:$0xf]  ;;  %v1271_v50 = vor.u32 %v1428_v43, %v1270_v42  ;;  %s1666_s25 = smov (!%p210_p6, %s1565_s25), 3 }
  0x1b   : > { %646 = vmatpush.bf16.msra.mxu1 %v1151_v33  ;;  %v1394_v51 = vld [vmem:[#allocation3 + $0xb4] sm:$0xf0]  ;;  %v1198_v52 = vld [vmem:[#allocation3 + $0x130] sm:$0xf]  ;;  %v1071_v56 = vor.u32 %v1378_v48, %v1070_v47  ;;  %v1062_v59 = vld [vmem:[#allocation3 + $0x20] sm:$0xf] }
  0x1c   : > { %660 = vmatpush.bf16.msra.mxu2 %v1215_v34  ;;  %v1410_v53 = vld [vmem:[#allocation3 + $0x134] sm:$0xf0]  ;;  %v1262_v54 = vld [vmem:[#allocation3 + $0x1b0] sm:$0xf]  ;;  %v1135_v57 = vor.u32 %v1394_v51, %v1134_v49  ;;  %v1376_v60 = vld [vmem:[#allocation3 + $0x24] sm:$0xf0] }
  0x1d   : > { %674 = vmatpush.bf16.msra.mxu3 %v1279_v38  ;;  %v1426_v55 = vld [vmem:[#allocation3 + $0x1b4] sm:$0xf0]  ;;  %v1199_v58 = vor.u32 %v1410_v53, %v1198_v52  ;;  %v1126_v61 = vld [vmem:[#allocation3 + $0xa0] sm:$0xf]  ;;  %v1392_v63 = vld [vmem:[#allocation3 + $0xa4] sm:$0xf0]  ;;  %v1063_v4 = vor.u32 %v1376_v60, %v1062_v59 }
  0x1e   : > { %633 = vmatpush.bf16.msra.mxu0 %v1079_v44  ;;  %v1263_v62 = vor.u32 %v1426_v55, %v1262_v54  ;;  %v1190_v0 = vld [vmem:[#allocation3 + $0x120] sm:$0xf]  ;;  %v1408_v1 = vld [vmem:[#allocation3 + $0x124] sm:$0xf0]  ;;  %v1054_v5 = vld [vmem:[#allocation3 + $0x10] sm:$0xf]  ;;  %v1127_v6 = vor.u32 %v1392_v63, %v1126_v61 }
  0x1f   : > { %647 = vmatpush.bf16.msra.mxu1 %v1143_v45  ;;  %v1254_v2 = vld [vmem:[#allocation3 + $0x1a0] sm:$0xf]  ;;  %v1424_v3 = vld [vmem:[#allocation3 + $0x1a4] sm:$0xf0]  ;;  %s1366_s26 = sshll.u32 %s1666_s25, 4  ;;  %v1191_v7 = vor.u32 %v1408_v1, %v1190_v0  ;;  %s1027_s12 = sshll.u32 %s1666_s25, 2 }
  0x20   : > { %661 = vmatpush.bf16.msra.mxu2 %v1207_v46  ;;  %v1374_v8 = vld [vmem:[#allocation3 + $0x14] sm:$0xf0]  ;;  %v1118_v9 = vld [vmem:[#allocation3 + $0x90] sm:$0xf]  ;;  %v1255_v11 = vor.u32 %v1424_v3, %v1254_v2  ;;  %v1046_v16 = vld [vmem:[#allocation3] sm:$0xf]  ;;  %s1579_s29 = scalar_lea.vmem %s1660_s0, %s1366_s26  ;;  %s220_s15 = scalar_lea.vmem %s1664_s4, %s1027_s12 }
  0x21   : > { %675 = vmatpush.bf16.msra.mxu3 %v1271_v50  ;;  %v1390_v10 = vld [vmem:[#allocation3 + $0x94] sm:$0xf0]  ;;  %v1182_v12 = vld [vmem:[#allocation3 + $0x110] sm:$0xf]  ;;  %v1372_v17 = vld [vmem:[#allocation3 + $0x4] sm:$0xf0]  ;;  %v1055_v18 = vor.u32 %v1374_v8, %v1054_v5 }
  0x22   : > { %634 = vmatpush.bf16.msra.mxu0 %v1071_v56  ;;  %v1406_v13 = vld [vmem:[#allocation3 + $0x114] sm:$0xf0]  ;;  %v1246_v14 = vld [vmem:[#allocation3 + $0x190] sm:$0xf]  ;;  %v1110_v19 = vld [vmem:[#allocation3 + $0x80] sm:$0xf]  ;;  %v1119_v23 = vor.u32 %v1390_v10, %v1118_v9  ;;  %v1047_v35 = vor.u32 %v1372_v17, %v1046_v16 }
  0x23   : > { %648 = vmatpush.bf16.msra.mxu1 %v1135_v57  ;;  %v1422_v15 = vld [vmem:[#allocation3 + $0x194] sm:$0xf0]  ;;  %v1388_v20 = vld [vmem:[#allocation3 + $0x84] sm:$0xf0]  ;;  %v1174_v21 = vld [vmem:[#allocation3 + $0x100] sm:$0xf]  ;;  %v1183_v24 = vor.u32 %v1406_v13, %v1182_v12 }
  0x24   : > { %662 = vmatpush.bf16.msra.mxu2 %v1199_v58  ;;  %v1404_v22 = vld [vmem:[#allocation3 + $0x104] sm:$0xf0]  ;;  %v1238_v25 = vld [vmem:[#allocation3 + $0x180] sm:$0xf]  ;;  %v1385_v27 = vld [vmem:[#allocation3 + $0x74] sm:$0xf]  ;;  %v1247_v28 = vor.u32 %v1422_v15, %v1246_v14  ;;  %v1111_v39 = vor.u32 %v1388_v20, %v1110_v19 }
  0x25   : > { %676 = vmatpush.bf16.msra.mxu3 %v1263_v62  ;;  %v1420_v26 = vld [vmem:[#allocation3 + $0x184] sm:$0xf0]  ;;  %v1104_v29 = vld [vmem:[#allocation3 + $0x78] sm:$0xf0]  ;;  %v1401_v30 = vld [vmem:[#allocation3 + $0xf4] sm:$0xf]  ;;  %v1175_v40 = vor.u32 %v1404_v22, %v1174_v21 }
  0x26   : > { %635 = vmatpush.bf16.msra.mxu0 %v1063_v4  ;;  %v1168_v31 = vld [vmem:[#allocation3 + $0xf8] sm:$0xf0]  ;;  %v1417_v32 = vld [vmem:[#allocation3 + $0x174] sm:$0xf]  ;;  %v1038_v37 = vld [vmem:[%s1579_s29 + $0x8] sm:$0xf]  ;;  %v1239_v44 = vor.u32 %v1420_v26, %v1238_v25  ;;  %v1107_v45 = vor.u32 %v1385_v27, %v1104_v29 }
  0x27   : > { %649 = vmatpush.bf16.msra.mxu1 %v1127_v6  ;;  %v1232_v33 = vld [vmem:[#allocation3 + $0x178] sm:$0xf0]  ;;  %v1433_v34 = vld [vmem:[#allocation3 + $0x1f4] sm:$0xf]  ;;  %v1370_v38 = vld [vmem:[%s1579_s29 + $0x14] sm:$0xf0]  ;;  %v1171_v49 = vor.u32 %v1401_v30, %v1168_v31 }
  0x28   : > { %663 = vmatpush.bf16.msra.mxu2 %v1191_v7  ;;  %v1296_v36 = vld [vmem:[#allocation3 + $0x1f8] sm:$0xf0]  ;;  %v1368_v41 = vld [vmem:[%s1579_s29 + $0xc] sm:$0xf]  ;;  %v1383_v43 = vld [vmem:[#allocation3 + $0x64] sm:$0xf]  ;;  %v1235_v50 = vor.u32 %v1417_v32, %v1232_v33  ;;  %v1589_v55 = vor.u32 %v1370_v38, %v1038_v37 }
  0x29   : > { %677 = vmatpush.bf16.msra.mxu3 %v1255_v11  ;;  %v1040_v42 = vld [vmem:[%s1579_s29 + $0x18] sm:$0xf0]  ;;  %v1096_v46 = vld [vmem:[#allocation3 + $0x68] sm:$0xf0]  ;;  %v1030_v47 = vld [vmem:[%s1579_s29] sm:$0xf]  ;;  %v1299_v54 = vor.u32 %v1433_v34, %v1296_v36 }
  0x2a   : > { %636 = vmatpush.bf16.msra.mxu0 %v1055_v18  ;;  %v1369_v48 = vld [vmem:[%s1579_s29 + $0xc] sm:$0xf0]  ;;  %v1399_v51 = vld [vmem:[#allocation3 + $0xe4] sm:$0xf]  ;;  %v1032_v53 = vld [vmem:[%s1579_s29 + $0x10] sm:$0xf0]  ;;  %v1591_v59 = vor.u32 %v1368_v41, %v1040_v42  ;;  %v1099_v63 = vor.u32 %v1383_v43, %v1096_v46 }
  0x2b   : > { %650 = vmatpush.bf16.msra.mxu1 %v1119_v23  ;;  %v1367_v52 = vld [vmem:[%s1579_s29 + $0x4] sm:$0xf]  ;;  %v1160_v56 = vld [vmem:[#allocation3 + $0xe8] sm:$0xf0]  ;;  %v1593_v62 = vor.u32 %v1369_v48, %v1030_v47  ;;  %v1381_v3 = vld [vmem:[#allocation3 + $0x54] sm:$0xf] }
  0x2c   : > { %664 = vmatpush.bf16.msra.mxu2 %v1183_v24  ;;  %v1415_v57 = vld [vmem:[#allocation3 + $0x164] sm:$0xf]  ;;  %v1224_v58 = vld [vmem:[#allocation3 + $0x168] sm:$0xf0]  ;;  %v1595_v0 = vor.u32 %v1367_v52, %v1032_v53  ;;  %v1163_v1 = vor.u32 %v1399_v51, %v1160_v56  ;;  %v1088_v4 = vld [vmem:[#allocation3 + $0x58] sm:$0xf0] }
  0x2d   : > { %678 = vmatpush.bf16.msra.mxu3 %v1247_v28  ;;  %v1431_v60 = vld [vmem:[#allocation3 + $0x1e4] sm:$0xf]  ;;  %v1288_v61 = vld [vmem:[#allocation3 + $0x1e8] sm:$0xf0]  ;;  %v1227_v2 = vor.u32 %v1415_v57, %v1224_v58  ;;  %v1397_v5 = vld [vmem:[#allocation3 + $0xd4] sm:$0xf]  ;;  %v1091_v12 = vor.u32 %v1381_v3, %v1088_v4 }
  0x2e   : > { %637 = vmatpush.bf16.msra.mxu0 %v1047_v35  ;;  %v1291_v6 = vor.u32 %v1431_v60, %v1288_v61  ;;  %v1152_v7 = vld [vmem:[#allocation3 + $0xd8] sm:$0xf0]  ;;  %v1413_v8 = vld [vmem:[#allocation3 + $0x154] sm:$0xf]  ;;  %v1379_v15 = vld [vmem:[#allocation3 + $0x44] sm:$0xf] }
  0x2f   : > { %651 = vmatpush.bf16.msra.mxu1 %v1111_v39  ;;  %v1216_v9 = vld [vmem:[#allocation3 + $0x158] sm:$0xf0]  ;;  %v1429_v10 = vld [vmem:[#allocation3 + $0x1d4] sm:$0xf]  ;;  %v1155_v13 = vor.u32 %v1397_v5, %v1152_v7  ;;  %v1080_v16 = vld [vmem:[#allocation3 + $0x48] sm:$0xf0] }
  0x30   : > { %665 = vmatpush.bf16.msra.mxu2 %v1175_v40  ;;  %v1280_v11 = vld [vmem:[#allocation3 + $0x1d8] sm:$0xf0]  ;;  %v1219_v14 = vor.u32 %v1413_v8, %v1216_v9  ;;  %v1395_v17 = vld [vmem:[#allocation3 + $0xc4] sm:$0xf]  ;;  %v1144_v19 = vld [vmem:[#allocation3 + $0xc8] sm:$0xf0]  ;;  %v1083_v24 = vor.u32 %v1379_v15, %v1080_v16 }
  0x31   : > { %679 = vmatpush.bf16.msra.mxu3 %v1239_v44  ;;  %638 = vmatmul.bf16.vlgmr.msra.gmra.mxu0 %v1593_v62  ;;  %v1283_v18 = vor.u32 %v1429_v10, %v1280_v11  ;;  %v1411_v20 = vld [vmem:[#allocation3 + $0x144] sm:$0xf]  ;;  %v1208_v21 = vld [vmem:[#allocation3 + $0x148] sm:$0xf0]  ;;  %v1147_v25 = vor.u32 %v1395_v17, %v1144_v19  ;;  %v1377_v27 = vld [vmem:[#allocation3 + $0x34] sm:$0xf] }
  0x32   : > { %686 = vmatpush.bf16.msrb.mxu0 %v1107_v45  ;;  %652 = vmatmul.bf16.vlgmr.msra.gmra.mxu1 %v1595_v0  ;;  %v1427_v22 = vld [vmem:[#allocation3 + $0x1c4] sm:$0xf]  ;;  %v1272_v23 = vld [vmem:[#allocation3 + $0x1c8] sm:$0xf0]  ;;  %v1211_v26 = vor.u32 %v1411_v20, %v1208_v21  ;;  %v1072_v28 = vld [vmem:[#allocation3 + $0x38] sm:$0xf0] }
  0x33   : > { %700 = vmatpush.bf16.msrb.mxu1 %v1171_v49  ;;  %666 = vmatmul.bf16.vlgmr.msra.gmra.mxu2 %v1589_v55  ;;  %v1393_v29 = vld [vmem:[#allocation3 + $0xb4] sm:$0xf]  ;;  %v1275_v30 = vor.u32 %v1427_v22, %v1272_v23  ;;  %v1136_v31 = vld [vmem:[#allocation3 + $0xb8] sm:$0xf0]  ;;  %v1075_v36 = vor.u32 %v1377_v27, %v1072_v28  ;;  %v1375_v39 = vld [vmem:[#allocation3 + $0x24] sm:$0xf] }
  0x34   : > { %714 = vmatpush.bf16.msrb.mxu2 %v1235_v50  ;;  %680 = vmatmul.bf16.vlgmr.msra.gmra.mxu3 %v1591_v59  ;;  %v1409_v32 = vld [vmem:[#allocation3 + $0x134] sm:$0xf]  ;;  %v1200_v33 = vld [vmem:[#allocation3 + $0x138] sm:$0xf0]  ;;  %v1139_v37 = vor.u32 %v1393_v29, %v1136_v31  ;;  %v1064_v40 = vld [vmem:[#allocation3 + $0x28] sm:$0xf0] }
  0x35   : > { %728 = vmatpush.bf16.msrb.mxu3 %v1299_v54  ;;  %v1425_v34 = vld [vmem:[#allocation3 + $0x1b4] sm:$0xf]  ;;  %v1264_v35 = vld [vmem:[#allocation3 + $0x1b8] sm:$0xf0]  ;;  %v1203_v38 = vor.u32 %v1409_v32, %v1200_v33  ;;  %v1391_v41 = vld [vmem:[#allocation3 + $0xa4] sm:$0xf]  ;;  %v1067_v48 = vor.u32 %v1375_v39, %v1064_v40 }
  0x36   : > { %687 = vmatpush.bf16.msrb.mxu0 %v1099_v63  ;;  %v1267_v42 = vor.u32 %v1425_v34, %v1264_v35  ;;  %v1128_v43 = vld [vmem:[#allocation3 + $0xa8] sm:$0xf0]  ;;  %v1407_v44 = vld [vmem:[#allocation3 + $0x124] sm:$0xf]  ;;  %v1373_v51 = vld [vmem:[#allocation3 + $0x14] sm:$0xf] }
  0x37   : > { %701 = vmatpush.bf16.msrb.mxu1 %v1163_v1  ;;  %v1192_v45 = vld [vmem:[#allocation3 + $0x128] sm:$0xf0]  ;;  %v1423_v46 = vld [vmem:[#allocation3 + $0x1a4] sm:$0xf]  ;;  %v1131_v49 = vor.u32 %v1391_v41, %v1128_v43  ;;  %v1056_v52 = vld [vmem:[#allocation3 + $0x18] sm:$0xf0] }
  0x38   : > { %715 = vmatpush.bf16.msrb.mxu2 %v1227_v2  ;;  %v1256_v47 = vld [vmem:[#allocation3 + $0x1a8] sm:$0xf0]  ;;  %v1195_v50 = vor.u32 %v1407_v44, %v1192_v45  ;;  %v1389_v53 = vld [vmem:[#allocation3 + $0x94] sm:$0xf]  ;;  %v1120_v56 = vld [vmem:[#allocation3 + $0x98] sm:$0xf0]  ;;  %v1059_v63 = vor.u32 %v1373_v51, %v1056_v52 }
  0x39   : > { %729 = vmatpush.bf16.msrb.mxu3 %v1291_v6  ;;  %v1259_v54 = vor.u32 %v1423_v46, %v1256_v47  ;;  %v1405_v57 = vld [vmem:[#allocation3 + $0x114] sm:$0xf]  ;;  %v1184_v58 = vld [vmem:[#allocation3 + $0x118] sm:$0xf0]  ;;  %v1123_v1 = vor.u32 %v1389_v53, %v1120_v56  ;;  %v1371_v3 = vld [vmem:[#allocation3 + $0x4] sm:$0xf] }
  0x3a   : > { %688 = vmatpush.bf16.msrb.mxu0 %v1091_v12  ;;  %v1421_v60 = vld [vmem:[#allocation3 + $0x194] sm:$0xf]  ;;  %v1248_v61 = vld [vmem:[#allocation3 + $0x198] sm:$0xf0]  ;;  %v1187_v2 = vor.u32 %v1405_v57, %v1184_v58  ;;  %v1048_v4 = vld [vmem:[#allocation3 + $0x8] sm:$0xf0] }
  0x3b   : > { %702 = vmatpush.bf16.msrb.mxu1 %v1155_v13  ;;  %v1387_v5 = vld [vmem:[#allocation3 + $0x84] sm:$0xf]  ;;  %v1251_v6 = vor.u32 %v1421_v60, %v1248_v61  ;;  %v1112_v7 = vld [vmem:[#allocation3 + $0x88] sm:$0xf0]  ;;  %v1051_v12 = vor.u32 %v1371_v3, %v1048_v4  ;;  %v1442_v16 = vld [vmem:[%s1662_s2 + $0x38] sm:$0xff]  ;;  %s742_s29 = sld [smem:[#allocation2]] }
  0x3c   : > { %716 = vmatpush.bf16.msrb.mxu2 %v1219_v14  ;;  %v1403_v8 = vld [vmem:[#allocation3 + $0x104] sm:$0xf]  ;;  %v1176_v9 = vld [vmem:[#allocation3 + $0x108] sm:$0xf0]  ;;  %v1115_v13 = vor.u32 %v1387_v5, %v1112_v7  ;;  %v1441_v17 = vld [vmem:[%s1662_s2 + $0x30] sm:$0xff] }
  0x3d   : > { %730 = vmatpush.bf16.msrb.mxu3 %v1283_v18  ;;  %v1419_v10 = vld [vmem:[#allocation3 + $0x184] sm:$0xf]  ;;  %v1240_v11 = vld [vmem:[#allocation3 + $0x188] sm:$0xf0]  ;;  %v1179_v14 = vor.u32 %v1403_v8, %v1176_v9  ;;  %v1450_v20 = vld [vmem:[%s1662_s2 + $0x78] sm:$0xff] }
  0x3e   : > { %689 = vmatpush.bf16.msrb.mxu0 %v1083_v24  ;;  %v1243_v15 = vor.u32 %v1419_v10, %v1240_v11  ;;  %v1440_v18 = vld [vmem:[%s1662_s2 + $0x28] sm:$0xff]  ;;  %v1439_v19 = vld [vmem:[%s1662_s2 + $0x20] sm:$0xff]  ;;  %v1449_v21 = vld [vmem:[%s1662_s2 + $0x70] sm:$0xff] }
  0x3f   : > { %703 = vmatpush.bf16.msrb.mxu1 %v1147_v25  ;;  %v1448_v22 = vld [vmem:[%s1662_s2 + $0x68] sm:$0xff]  ;;  %v1447_v23 = vld [vmem:[%s1662_s2 + $0x60] sm:$0xff]  ;;  %v1446_v28 = vld [vmem:[%s1662_s2 + $0x58] sm:$0xff] }
  0x40   : > { %717 = vmatpush.bf16.msrb.mxu2 %v1211_v26  ;;  %v1445_v33 = vld [vmem:[%s1662_s2 + $0x50] sm:$0xff]  ;;  %v1443_v43 = vld [vmem:[%s1662_s2 + $0x40] sm:$0xff] }
  0x41   : > { %731 = vmatpush.bf16.msrb.mxu3 %v1275_v30 }
  0x42   : > { %690 = vmatpush.bf16.msrb.mxu0 %v1075_v36  ;;  %v747_v36 = vstv %s742_s29 }
  0x43   : > { %704 = vmatpush.bf16.msrb.mxu1 %v1139_v37 }
  0x44   : > { %718 = vmatpush.bf16.msrb.mxu2 %v1203_v38  ;;  %v1444_v38 = vld [vmem:[%s1662_s2 + $0x48] sm:$0xff] }
  0x45   : > { %732 = vmatpush.bf16.msrb.mxu3 %v1267_v42 }
  0x46   : > { %691 = vmatpush.bf16.msrb.mxu0 %v1067_v48 }
  0x47   : > { %705 = vmatpush.bf16.msrb.mxu1 %v1131_v49 }
  0x48   : > { %719 = vmatpush.bf16.msrb.mxu2 %v1195_v50 }
  0x49   : > { %733 = vmatpush.bf16.msrb.mxu3 %v1259_v54 }
  0x4a   : > { %692 = vmatpush.bf16.msrb.mxu0 %v1059_v63 }
  0x4b   : > { %706 = vmatpush.bf16.msrb.mxu1 %v1123_v1 }
  0x4c   : > { %720 = vmatpush.bf16.msrb.mxu2 %v1187_v2 }
  0x4d   : > { %734 = vmatpush.bf16.msrb.mxu3 %v1251_v6 }
  0x4e   : > { %693 = vmatpush.bf16.msrb.mxu0 %v1051_v12 }
  0x4f   : > { %707 = vmatpush.bf16.msrb.mxu1 %v1115_v13 }
  0x50   : > { %721 = vmatpush.bf16.msrb.mxu2 %v1179_v14 }
  0x51   : > { %735 = vmatpush.bf16.msrb.mxu3 %v1243_v15  ;;  %694 = vmatmul.bf16.vlgmr.msrb.gmra.mxu0 %v1593_v62  ;;  %v1438_v62 = vld [vmem:[%s1662_s2 + $0x18] sm:$0xff] }
  0x52   : > { %886 = vmatpush.bf16.msra.mxu0 %v1442_v16  ;;  %708 = vmatmul.bf16.vlgmr.msrb.gmra.mxu1 %v1595_v0  ;;  %v1435_v0 = vld [vmem:[%s1662_s2] sm:$0xff] }
  0x53   : > { %722 = vmatmul.bf16.vlgmr.msrb.gmra.mxu2 %v1589_v55  ;;  %v1437_v55 = vld [vmem:[%s1662_s2 + $0x10] sm:$0xff]  ;;  %900 = vmatpush.bf16.msra.mxu1 %v1450_v20 }
  0x54   : > { %736 = vmatmul.bf16.vlgmr.msrb.gmra.mxu3 %v1591_v59  ;;  %v1436_v59 = vld [vmem:[%s1662_s2 + $0x8] sm:$0xff] }
  0x56   : > { %887 = vmatpush.bf16.msra.mxu0 %v1441_v17 }
  0x57   : > { %901 = vmatpush.bf16.msra.mxu1 %v1449_v21 }
  0x5a   : > { %888 = vmatpush.bf16.msra.mxu0 %v1440_v18 }
  0x5b   : > { %902 = vmatpush.bf16.msra.mxu1 %v1448_v22 }
  0x5e   : > { %889 = vmatpush.bf16.msra.mxu0 %v1439_v19 }
  0x5f   : > { %903 = vmatpush.bf16.msra.mxu1 %v1447_v23 }
  0x62   : > { %890 = vmatpush.bf16.msra.mxu0 %v1438_v62 }
  0x63   : > { %904 = vmatpush.bf16.msra.mxu1 %v1446_v28 }
  0x66   : > { %891 = vmatpush.bf16.msra.mxu0 %v1437_v55 }
  0x67   : > { %905 = vmatpush.bf16.msra.mxu1 %v1445_v33 }
  0x6a   : > { %892 = vmatpush.bf16.msra.mxu0 %v1436_v59 }
  0x6b   : > { %906 = vmatpush.bf16.msra.mxu1 %v1444_v38 }
  0x6e   : > { %893 = vmatpush.bf16.msra.mxu0 %v1435_v0 }
  0x6f   : > { %907 = vmatpush.bf16.msra.mxu1 %v1443_v43 }
  0xae   : > { %v639_v24 = vpop.f32.mrf.mxu0 }
  0xaf   : > { %v653_v25 = vpop.f32.mrf.mxu1 }
  0xb0   : > { %v654_v26 = vadd.f32 %v653_v25, %v639_v24 }
  0xb6   : > { %v667_v27 = vpop.f32.mrf.mxu2  ;;  %v641_v31 = vpop.f32.mrf.mxu0 }
  0xb7   : > { %v668_v29 = vadd.f32 %v667_v27, %v654_v26  ;;  %v681_v30 = vpop.f32.mrf.mxu3  ;;  %v655_v32 = vpop.f32.mrf.mxu1 }
  0xb8   : > { %v656_v35 = vadd.f32 %v655_v32, %v641_v31 }
  0xb9   : > { %v682_v34 = vadd.f32 %v681_v30, %v668_v29 }
  0xbb   : > { %v748_v39 = vmul.f32 %v747_v36, %v682_v34  ;;  %vm743_vm0 = vcmp.ge.f32.partialorder %v682_v34, 0.0 }
  0xbd   : > { %v752_v44 = vsel %vm743_vm0, %v682_v34, %v748_v39 }
  0xbe   : > { %v669_v37 = vpop.f32.mrf.mxu2 }
  0xbf   : > { %v670_v40 = vadd.f32 %v669_v37, %v656_v35  ;;  %v683_v41 = vpop.f32.mrf.mxu3 }
  0xc1   : > { %v684_v42 = vadd.f32 %v683_v41, %v670_v40 }
  0xc3   : > { %vm745_vm1 = vcmp.ge.f32.partialorder %v684_v42, 0.0  ;;  %v750_v45 = vmul.f32 %v747_v36, %v684_v42 }
  0xc5   : > { %v754_v46 = vsel %vm745_vm1, %v684_v42, %v750_v45 }
  0xc6   : > { %v756_v47 = vpack.c.bf16 %v754_v46, %v752_v44 }
  0xc8   : > { %894 = vmatmul.bf16.vlgmr.msra.gmra.mxu0 %v756_v47 }
  0xce   : > { %v695_v48 = vpop.f32.mrf.mxu0 }
  0xcf   : > { %v709_v49 = vpop.f32.mrf.mxu1 }
  0xd0   : > { %v710_v50 = vadd.f32 %v709_v49, %v695_v48 }
  0xd6   : > { %v723_v51 = vpop.f32.mrf.mxu2  ;;  %v697_v54 = vpop.f32.mrf.mxu0 }
  0xd7   : > { %v737_v52 = vpop.f32.mrf.mxu3  ;;  %v724_v53 = vadd.f32 %v723_v51, %v710_v50  ;;  %v711_v56 = vpop.f32.mrf.mxu1 }
  0xd8   : > { %v712_v58 = vadd.f32 %v711_v56, %v697_v54 }
  0xd9   : > { %v738_v57 = vadd.f32 %v737_v52, %v724_v53 }
  0xdb   : > { %v749_v1 = vmul.f32 %v747_v36, %v738_v57  ;;  %vm744_vm2 = vcmp.ge.f32.partialorder %v738_v57, 0.0 }
  0xdd   : > { %v753_v4 = vsel %vm744_vm2, %v738_v57, %v749_v1 }
  0xde   : > { %v725_v60 = vpop.f32.mrf.mxu2 }
  0xdf   : > { %v726_v61 = vadd.f32 %v725_v60, %v712_v58  ;;  %v739_v63 = vpop.f32.mrf.mxu3 }
  0xe1   : > { %v740_v2 = vadd.f32 %v739_v63, %v726_v61 }
  0xe3   : > { %vm746_vm3 = vcmp.ge.f32.partialorder %v740_v2, 0.0  ;;  %v751_v3 = vmul.f32 %v747_v36, %v740_v2 }
  0xe5   : > { %v755_v5 = vsel %vm746_vm3, %v740_v2, %v751_v3 }
  0xe6   : > { %v757_v6 = vpack.c.bf16 %v755_v5, %v753_v4 }
  0xe8   : > { %908 = vmatmul.bf16.vlgmr.msra.gmra.mxu1 %v757_v6 }
 0x145   : > { %v895_v7 = vpop.f32.mrf.mxu0 }
 0x14d   : > { %v897_v11 = vpop.f32.mrf.mxu0 }
 0x165   : > { %v909_v8 = vpop.f32.mrf.mxu1 }
 0x166   : > { %v910_v9 = vadd.f32 %v909_v8, %v895_v7 }
 0x168   : > { %v914_v10 = vmul.f32 %v910_v9, %v910_v9 }
 0x16a   : > { %916 = vadd.xlane.f32.xlu0 %v914_v10 }
 0x16d   : > { %v911_v12 = vpop.f32.mrf.mxu1 }
 0x16e   : > { %v912_v13 = vadd.f32 %v911_v12, %v897_v11 }
 0x170   : > { %v915_v14 = vmul.f32 %v912_v13, %v912_v13 }
 0x172   : > { %918 = vadd.xlane.f32.xlu0 %v915_v14 }
 0x1dd   : > { %v917_v15 = vpop.xlane.xlu0 %916 }
 0x1de   : > { %v920_v16 = vmax.f32 %v917_v15, 1e-24 }
 0x1e0   : > { %1477 = vrsqrt.f32 %v920_v16  ;;  %vm928_vm5 = vweird.f32 %v920_v16 }
 0x1e5   : > { %v919_v17 = vpop.xlane.xlu0 %918 }
 0x1e6   : > { %v1478_v18 = vpop.eup %1477  ;;  %v921_v19 = vmax.f32 %v919_v17, 1e-24 }
 0x1e7   : > { %v923_v62 = vmul.f32 %v1478_v18, %v920_v16  ;;  %vm929_vm4 = vweird.f32 %v1478_v18 }
 0x1e8   : > { %1479 = vrsqrt.f32 %v921_v19  ;;  %vm930_vm7 = vmor %vm928_vm5, %vm929_vm4  ;;  %vm938_vm8 = vweird.f32 %v921_v19 }
 0x1e9   : > { %v924_v55 = vmul.f32 %v1478_v18, %v923_v62 }
 0x1eb   : > { %v925_v59 = vmul.f32 0.5, %v924_v55 }
 0x1ed   : > { %v926_v20 = vsub.f32 1.5, %v925_v59 }
 0x1ee   : > { %v1480_v0 = vpop.eup %1479 }
 0x1ef   : > { %v933_v21 = vmul.f32 %v1480_v0, %v921_v19  ;;  %v927_v23 = vmul.f32 %v1478_v18, %v926_v20  ;;  %vm939_vm6 = vweird.f32 %v1480_v0 }
 0x1f0   : > { %vm940_vm9 = vmor %vm938_vm8, %vm939_vm6 }
 0x1f1   : > { %v934_v22 = vmul.f32 %v1480_v0, %v933_v21  ;;  %v931_v26 = vsel %vm930_vm7, %v1478_v18, %v927_v23 }
 0x1f2   : > { %v942_v29 = vmul.f32 %v931_v26, %v910_v9 }
 0x1f3   : > { %v935_v24 = vmul.f32 0.5, %v934_v22 }
 0x1f5   : > { %v936_v25 = vsub.f32 1.5, %v935_v24 }
 0x1f7   : > { %v937_v27 = vmul.f32 %v1480_v0, %v936_v25 }
 0x1f9   : > { %v941_v28 = vsel %vm940_vm9, %v1480_v0, %v937_v27 }
 0x1fa   : > { %v943_v30 = vmul.f32 %v941_v28, %v912_v13 }
 0x1fc   : > { %v1454_v31 = vpack.c.bf16 %v943_v30, %v942_v29 }
 0x1fe   : > { %1455 = vst [vmem:[%s220_s15] sm:$0xff] %v1454_v31  }
 0x1ff PF: > { %s16_s17 = sadd.s32 1, %s1521_s17  }
 0x200   : > { %p13_p7 = scmp.ge.s32.totalorder %s16_s17, 4  }
 0x202   :  { %15 = sbr.rel (!%p13_p7) target bundleno = 3 (0x3), region = 71 }
 0x207   :  { %970 = vsyncpa [#allocation4], 1 }
 0x208   :  { %972 = vsyncpa [#allocation4 + $0x1], 1 }

</bundles_post_ra>
